<compile_context>
chip_gen: v6e
topology: v6e:2x2x1
jax: 0.10.0
libtpu: 0.0.40
codegen_flags: <defaults>
</compile_context>

<pallas_src>
import jax
import jax.numpy as jnp
import numpy as np
from jax.experimental import pallas as pl
from jax.experimental.pallas import tpu as pltpu


# ---------------------------------------------------------------------------
# Pallas kernel: per-edge DistMult score for one edge tile
# ---------------------------------------------------------------------------
def _dismult_kernel(rel_ids_ref, u_ref, v_ref, r_ref, out_ref):
    # rel_ids_ref : SMEM (num_tiles,) int32 -- relation row for each tile
    # u_ref, v_ref: (TE, D)          src/dst embeddings for this edge tile
    # r_ref       : (num_rels+1,1,D) VMEM-resident relation table
    # out_ref     : (1, 1, TE)       per-edge scores, lane-dense
    rid = rel_ids_ref[pl.program_id(0)]          # scalar relation row id
    prod = u_ref[...] * v_ref[...]               # (TE, D) elementwise, native dtype
    r = r_ref[rid]                               # (1, D) dynamic row of resident table
    # score = r . prod^T -> (1, TE): D-reduction + sublane->lane transpose in
    # one MXU op, producing a lane-dense result.
    if prod.dtype == jnp.float32:
        s = jax.lax.dot_general(
            r, prod,
            dimension_numbers=(((1,), (1,)), ((), ())),
            preferred_element_type=jnp.float32,
            precision=jax.lax.Precision.HIGHEST)
    else:  # bf16 etc.: MXU-native inputs, f32 accumulation
        s = jax.lax.dot_general(
            r, prod,
            dimension_numbers=(((1,), (1,)), ((), ())),
            preferred_element_type=jnp.float32)
    out_ref[0] = s.astype(out_ref.dtype)


# ---------------------------------------------------------------------------
# Per-generation sizing
# ---------------------------------------------------------------------------
def _round_up(x, m):
    return -(-x // m) * m


def _hw_config():
    """Per-step DMA budget (double-buffered u+v footprint) and VMEM limit."""
    cfg = dict(target_bytes=16 * 1024 * 1024,     # safe everywhere
               max_tile=8192,
               vmem_limit=48 * 1024 * 1024)       # <= v7x 64 MiB physical VMEM
    try:
        vmem = int(getattr(pltpu.get_tpu_info(), "vmem_capacity_bytes"))
        if vmem >= 96 * 1024 * 1024:              # v5e / v6e: 128 MiB VMEM
            cfg.update(target_bytes=32 * 1024 * 1024,
                       vmem_limit=64 * 1024 * 1024)
        else:                                     # v7x: 64 MiB per TensorCore
            cfg.update(target_bytes=24 * 1024 * 1024,
                       vmem_limit=48 * 1024 * 1024)
    except Exception:
        pass
    return cfg


def _choose_edge_tile(D, itemsize, max_type_edges, *, target_bytes, max_tile):
    # VMEM footprint per step ~ 2 inputs x 2 pipeline buffers x TE x D_pad.
    d_pad = _round_up(max(int(D), 1), 128)        # lane padding in VMEM layout
    per_row = 4 * d_pad * itemsize
    tile = (target_bytes // per_row) // 128 * 128
    tile = max(128, min(tile, max_tile))
    # A tile larger than the largest edge type only adds padding traffic.
    tile = max(128, min(tile, _round_up(max(int(max_type_edges), 1), 128)))
    return int(tile)


# ---------------------------------------------------------------------------
# Batched score computation (one pallas_call for all edge types)
# ---------------------------------------------------------------------------
def dismult_scores_batched(u, v, rel_table, rel_ids, *, edge_tile,
                           vmem_limit_bytes):
    """u, v: (E_pad, D) gathered endpoint embeddings, E_pad = num_tiles*edge_tile.
    rel_table: (num_rels+1, 1, D). rel_ids: (num_tiles,) int32 relation row/tile.
    Returns (E_pad,) flat scores (padded entries are garbage; caller slices)."""
    E_pad, D = u.shape
    num_tiles = E_pad // edge_tile
    assert num_tiles * edge_tile == E_pad and num_tiles == rel_ids.shape[0]
    n_rel = rel_table.shape[0]

    out = pl.pallas_call(
        _dismult_kernel,
        out_shape=jax.ShapeDtypeStruct((num_tiles, 1, edge_tile), u.dtype),
        grid_spec=pltpu.PrefetchScalarGridSpec(
            num_scalar_prefetch=1,
            grid=(num_tiles,),
            in_specs=[
                pl.BlockSpec((edge_tile, D), lambda i, rid: (i, 0)),
                pl.BlockSpec((edge_tile, D), lambda i, rid: (i, 0)),
                # Full relation table, constant index_map -> VMEM resident.
                pl.BlockSpec((n_rel, 1, D), lambda i, rid: (0, 0, 0)),
            ],
            out_specs=pl.BlockSpec((1, 1, edge_tile), lambda i, rid: (i, 0, 0)),
        ),
        compiler_params=pltpu.CompilerParams(
            dimension_semantics=("parallel",),
            vmem_limit_bytes=vmem_limit_bytes,
        ),
    )(rel_ids, u, v, rel_table)
    return out.reshape(-1)


# ---------------------------------------------------------------------------
# DisMult module (parameters + forward) in JAX
# ---------------------------------------------------------------------------
def xavier_uniform(key, shape):
    # nn.init.xavier_uniform_ for a (1, dim) tensor
    fan_in, fan_out = shape[0], shape[1]
    bound = float(np.sqrt(6.0 / (fan_in + fan_out)))
    return jax.random.uniform(key, shape, jnp.float32, -bound, bound)


class DisMult:
    def __init__(self, canonical_etypes, dim, key):
        self.canonical_etypes = list(canonical_etypes)
        self.dim = dim
        self.rel_embedding = {}
        keys = jax.random.split(key, len(self.canonical_etypes) + 1)
        self.rel_embedding['_no_relation'] = xavier_uniform(keys[0], (1, dim))
        for i, k in enumerate(self.canonical_etypes):
            self.rel_embedding[k] = xavier_uniform(keys[i + 1], (1, dim))
        # Row index into the stacked relation table: 0 = '_no_relation'.
        self._rel_row = {k: i + 1 for i, k in enumerate(self.canonical_etypes)}

    def _stacked_rel_table(self, dtype):
        rows = [self.rel_embedding['_no_relation']]
        rows += [self.rel_embedding[k] for k in self.canonical_etypes]
        return jnp.stack(rows, axis=0).astype(dtype)   # (num_rels+1, 1, D)

    def forward(self, graph_edges, node_embeds, is_neg=False):
        """graph_edges: dict {canonical_etype: (src_idx (E,), dst_idx (E,))}
        node_embeds: (N, D) node features ('x' in the torch code).
        Returns {etype: (E,) scores}."""
        dtype = node_embeds.dtype
        e_counts = [int(s.shape[0]) for (s, _) in graph_edges.values()]
        if not e_counts or max(e_counts) == 0:          # no edges anywhere
            return {etype: jnp.zeros((0,), dtype=dtype)
                    for etype in graph_edges}

        cfg = _hw_config()
        edge_tile = _choose_edge_tile(self.dim, dtype.itemsize, max(e_counts),
                                      target_bytes=cfg["target_bytes"],
                                      max_tile=cfg["max_tile"])

        # Megacore: ensure >= 2 grid steps when there is enough work so the
        # 'parallel' grid axis can shard across v7x's two TensorCores.
        def _total_tiles(t):
            return sum(-(-e // t) for e in e_counts if e > 0)
        while edge_tile > 128 and _total_tiles(edge_tile) < 2:
            edge_tile = max(128, (edge_tile // 2) // 128 * 128)

        order = []                               # (etype, E_t, n_tiles_t)
        src_parts, dst_parts, tile_rel_ids = [], [], []
        for etype, (src_idx, dst_idx) in graph_edges.items():
            E_t = int(src_idx.shape[0])
            n_tiles_t = -(-E_t // edge_tile) if E_t > 0 else 0
            order.append((etype, E_t, n_tiles_t))
            if E_t == 0:
                continue
            pad = n_tiles_t * edge_tile - E_t
            # Pad the cheap index arrays (O(E)), not the (E, D) gathered data.
            src_parts.append(jnp.pad(jnp.asarray(src_idx, jnp.int32), (0, pad)))
            dst_parts.append(jnp.pad(jnp.asarray(dst_idx, jnp.int32), (0, pad)))
            row = 0 if is_neg else self._rel_row[etype]
            tile_rel_ids.extend([row] * n_tiles_t)

        src_all = jnp.concatenate(src_parts)
        dst_all = jnp.concatenate(dst_parts)
        rel_ids = jnp.asarray(tile_rel_ids, dtype=jnp.int32)

        # Endpoint gather (DGL u_mul_v endpoints).
        # TODO(synk): fuse this gather into the kernel (resident node table or
        # manual DMA row-gather) to remove the write+re-read of 2*E*D elements.
        u = jnp.take(node_embeds, src_all, axis=0)
        v = jnp.take(node_embeds, dst_all, axis=0)

        flat = dismult_scores_batched(
            u, v, self._stacked_rel_table(dtype), rel_ids,
            edge_tile=edge_tile, vmem_limit_bytes=cfg["vmem_limit"])

        scores, off = {}, 0
        for etype, E_t, n_tiles_t in order:
            if E_t == 0:
                scores[etype] = jnp.zeros((0,), dtype=dtype)
                continue
            scores[etype] = flat[off:off + E_t]
            off += n_tiles_t * edge_tile
        return scores


# ---------------------------------------------------------------------------
# Demo / self-check
# ---------------------------------------------------------------------------
if __name__ == "__main__":
    key = jax.random.PRNGKey(0)
    k_nodes, k_rel, k_e0s, k_e0d, k_e1s, k_e1d = jax.random.split(key, 6)

    N = 16          # number of nodes
    D = 32          # embedding dim
    canonical_etypes = [
        ("user", "clicks", "item"),
        ("user", "buys", "item"),
    ]

    model = DisMult(canonical_etypes, D, k_rel)
    node_embeds = jax.random.normal(k_nodes, (N, D), jnp.float32)

    graph_edges = {
        canonical_etypes[0]: (
            jax.random.randint(k_e0s, (10,), 0, N),
            jax.random.randint(k_e0d, (10,), 0, N),
        ),
        canonical_etypes[1]: (
            jax.random.randint(k_e1s, (6,), 0, N),
            jax.random.randint(k_e1d, (6,), 0, N),
        ),
    }

    # Positive-edge scores and negative-edge ('_no_relation') scores
    scores = model.forward(graph_edges, node_embeds, is_neg=False)
    neg_scores = model.forward(graph_edges, node_embeds, is_neg=True)
    for s in list(scores.values()) + list(neg_scores.values()):
        jax.block_until_ready(s)

    # Pure-numpy (float64) reference check
    x = np.asarray(node_embeds, dtype=np.float64)
    ok = True
    for etype, (src_idx, dst_idx) in graph_edges.items():
        si = np.asarray(src_idx)
        di = np.asarray(dst_idx)
        uv = x[si] * x[di]
        r_pos = np.asarray(model.rel_embedding[etype], dtype=np.float64)[0]
        r_neg = np.asarray(model.rel_embedding['_no_relation'], dtype=np.float64)[0]
        ref_pos = (uv * r_pos).sum(-1)
        ref_neg = (uv * r_neg).sum(-1)
        ok &= bool(np.allclose(np.asarray(scores[etype]), ref_pos,
                               rtol=1e-5, atol=1e-5))
        ok &= bool(np.allclose(np.asarray(neg_scores[etype]), ref_neg,
                               rtol=1e-5, atol=1e-5))

    if ok:
        print("KERNEL_OK")
    else:
        print("MISMATCH")
</pallas_src>

<mosaic_0001>
module attributes {stable_mosaic.version = 11 : i64} {
  func.func @_dismult_kernel(%arg0: i32, %arg1: memref<2xi32, #tpu.memory_space<smem>>, %arg2: memref<128x32xf32, #tpu.memory_space<vmem>>, %arg3: memref<128x32xf32, #tpu.memory_space<vmem>>, %arg4: memref<3x1x32xf32, #tpu.memory_space<vmem>>, %arg5: memref<1x1x128xf32, #tpu.memory_space<vmem>>) attributes {dimension_semantics = [#tpu.dimension_semantics<parallel>], iteration_bounds = array<i64: 2>, scalar_prefetch = 1 : i64, scratch_operands = 0 : i64, tpu.core_type = #tpu.core_type<tc>, window_params = [{transform_indices = @transform_0, window_bounds = array<i64: 128, 32>}, {transform_indices = @transform_1, window_bounds = array<i64: 128, 32>}, {pipeline_mode = #tpu.pipeline_mode<synchronous>, transform_indices = @transform_2, window_bounds = array<i64: 3, 1, 32>}, {transform_indices = @transform_3, window_bounds = array<i64: 1, 1, 128>}]} {
    %0 = arith.index_cast %arg0 : i32 to index
    %1 = memref.load %arg1[%0] : memref<2xi32, #tpu.memory_space<smem>>
    %c0 = arith.constant 0 : index
    %c0_0 = arith.constant 0 : index
    %2 = vector.load %arg2[%c0, %c0_0] : memref<128x32xf32, #tpu.memory_space<vmem>>, vector<128x32xf32>
    %c0_1 = arith.constant 0 : index
    %c0_2 = arith.constant 0 : index
    %3 = vector.load %arg3[%c0_1, %c0_2] : memref<128x32xf32, #tpu.memory_space<vmem>>, vector<128x32xf32>
    %4 = arith.mulf %2, %3 : vector<128x32xf32>
    %5 = arith.index_cast %1 : i32 to index
    %c0_3 = arith.constant 0 : index
    %c0_4 = arith.constant 0 : index
    %6 = vector.load %arg4[%5, %c0_3, %c0_4] : memref<3x1x32xf32, #tpu.memory_space<vmem>>, vector<1x1x32xf32>
    %7 = vector.shape_cast %6 : vector<1x1x32xf32> to vector<1x32xf32>
    %cst = arith.constant dense<0.000000e+00> : vector<1x128xf32>
    %8 = tpu.matmul %7, %4, %cst {dimension_numbers = #tpu.dot_dimension_numbers<[1], [1], [0], [0], [0, 0, 1, 0], [], []>, precision = #tpu.contract_precision<fp32>} : vector<1x32xf32>, vector<128x32xf32>, vector<1x128xf32> -> vector<1x128xf32>
    %c0_5 = arith.constant 0 : index
    %c0_6 = arith.constant 0 : index
    %c0_7 = arith.constant 0 : index
    %9 = vector.load %arg5[%c0_5, %c0_6, %c0_7] : memref<1x1x128xf32, #tpu.memory_space<vmem>>, vector<1x1x128xf32>
    %10 = vector.shape_cast %9 : vector<1x1x128xf32> to vector<1x128xf32>
    %11 = vector.shape_cast %8 : vector<1x128xf32> to vector<1x1x128xf32>
    tpu.vector_store %arg5[%c0_5, %c0_6, %c0_7], %11 {strides = array<i32>} : memref<1x1x128xf32, #tpu.memory_space<vmem>>, vector<1x1x128xf32>,
    return
  }
  func.func @transform_0(%arg0: i32, %arg1: memref<2xi32, #tpu.memory_space<smem>>) -> (i32, i32) {
    %c0_i32 = arith.constant 0 : i32
    %c0_i32_0 = arith.constant 0 : i32
    return %arg0, %c0_i32 : i32, i32
  }
  func.func @transform_1(%arg0: i32, %arg1: memref<2xi32, #tpu.memory_space<smem>>) -> (i32, i32) {
    %c0_i32 = arith.constant 0 : i32
    %c0_i32_0 = arith.constant 0 : i32
    return %arg0, %c0_i32 : i32, i32
  }
  func.func @transform_2(%arg0: i32, %arg1: memref<2xi32, #tpu.memory_space<smem>>) -> (i32, i32, i32) {
    %c0_i32 = arith.constant 0 : i32
    %c0_i32_0 = arith.constant 0 : i32
    %c0_i32_1 = arith.constant 0 : i32
    %c0_i32_2 = arith.constant 0 : i32
    return %c0_i32, %c0_i32_0, %c0_i32_1 : i32, i32, i32
  }
  func.func @transform_3(%arg0: i32, %arg1: memref<2xi32, #tpu.memory_space<smem>>) -> (i32, i32, i32) {
    %c0_i32 = arith.constant 0 : i32
    %c0_i32_0 = arith.constant 0 : i32
    %c0_i32_1 = arith.constant 0 : i32
    return %arg0, %c0_i32, %c0_i32_0 : i32, i32, i32
  }
}

</mosaic_0001>

<bundles_post_ra>
// kernel: tpu_custom_call.1
= control target key start
LH: loop header
LB: loop body
LE: loop exit
PB: predicated region body
PF: predicated region fallthrough
CT: control target
= control target key end

     0   :  { %s2020_s0 = inlined_call_operand.vmem [shape: s32[2], index: 0, kind: input, shape index: {}]   ;;  %s2021_s1 = inlined_call_operand.vmem [shape: f32[256,32], index: 1, kind: input, shape index: {}]   ;;  %s2022_s2 = inlined_call_operand.vmem [shape: f32[256,32], index: 2, kind: input, shape index: {}]   ;;  %s2023_s3 = inlined_call_operand.vmem [shape: f32[3,1,32], index: 3, kind: input, shape index: {}]   ;;  %s2024_s4 = inlined_call_operand.hbm [shape: f32[2,1,128], index: 4, kind: output, shape index: {}]  }
   0x1   :  { %s9_s17 = sshll.u32 %s2020_s0, 4  ;;  %s10_s17 = int_to_ptr.vmem [resolvable:$true] %s9_s17 }
   0x2   :  { %s1390_s18 = scalar_lea.vmem %s10_s17, 16  ;;  %p1395_p1 = scmp.lt.s32.totalorder %s10_s17, %s10_s17 }
   0x3   :  { %p1391_p0 = scmp.ne.s32.totalorder %s10_s17, %s1390_s18  ;;  %p1396_p2 = scmp.lt.s32.totalorder %s1390_s18, %s1390_s18 }
   0x5   :  { %p1397_p3 = por %p1396_p2, %p1395_p1 }
   0x7   :  { %p1398_p4 = pnand %p1397_p3, %p1391_p0 }
   0x9   :  { %1401 = shalt.err (!%p1398_p4)  }
   0xa   :  { %s1466_s19 = smov [#allocation3]  }
   0xb   :  { %12 = dma.vmem_to_smem %s10_s17, 16, %s1466_s19, [#allocation2] }
   0xc   :  { %1444 = dma.done.wait [#allocation2], 16 }
   0xd   :  { %1445 = vsyncadd [#allocation2], 4294967280 }
   0xe   :  { %14 = sfence }
   0xf   :  { %15 = vsyncpa [#allocation5], 0 }
  0x10   :  { %17 = vsyncpa [#allocation5 + $0x1], 0  ;;  %s1498_s20 = smov 0   ;;  %s1500_s21 = smov 0  }
  0x11   :  { %s1502_s0 = smov 0   ;;  %s1504_s22 = smov 0  }
  0x12 LB: > { %s1519_s23 = sadd.s32 4294967295, %s1464_s22   ;;  %s1025_s24 = sadd.s32 4294967294, %s1464_s22   ;;  %s1464_s22 = sphi %s1504_s22, %s2030_s22   ;;  %s1460_s0 = sphi %s1502_s0, %s2029_s0   ;;  %s1456_s21 = sphi %s1500_s21, %s2028_s21   ;;  %s1452_s20 = sphi %s1498_s20, %s2027_s20  }
  0x13   : > { %s1523_s25 = sadd.s32 1, %s1464_s22   ;;  %s103_s26 = sadd.s32 1, %s1460_s0 }
  0x14   : > { %s100_s27 = ssub.s32 %s1464_s22, %s1523_s25  ;;  %p113_p5 = scmp.ne.s32.totalorder %s1460_s0, %s1456_s21 }
  0x15   : > { %p101_p6 = scmp.eq.s32.totalorder %s100_s27, 0  ;;  %p114_p7 = scmp.eq.s32.totalorder %s1519_s23, 1 }
  0x16   : > { %p119_p8 = scmp.ne.s32.totalorder %s1456_s21, %s1452_s20  ;;  %p120_p9 = scmp.eq.s32.totalorder %s1025_s24, 1 }
  0x17   : > { %s1534_s28 = scalar_select %p101_p6, %s1460_s0, %s103_s26  }
  0x18   : > { %p1536_p10 = por %p114_p7, %p113_p5  ;;  %p1540_p11 = por %p120_p9, %p119_p8 }
  0x19   : > { %p1028_p12 = scmp.ge.s32.totalorder %s1464_s22, 1  ;;  %p159_p13 = scmp.lt.s32.totalorder %s1464_s22, 3 }
  0x1b   : > { %p160_p0 = pnand %p1028_p12, %p159_p13 }
  0x1c   : > { %s1547_s5 = sshll.u32 (!%p160_p0), %s1519_s23, 4  ;;  %s1700_s14 = sld [smem:[#allocation3 + %s1519_s23]] (!%p160_p0) }
  0x1d   : > { %163 = sbr.rel (%p160_p0) target bundleno = 452 (0x1c4), region = 32  ;;  %p188_p1 = scmp.lt.s32.totalorder (!%p160_p0), %s1547_s5, 31 }
  0x1e   : > { %s185_s18 = sand.u32 (!%p160_p0), 1, %s1456_s21   ;;  %s1985_s27 = scalar_lea.hbm (!%p160_p0), %s2024_s4, %s1547_s5 }
  0x1f   : > { %s186_s19 = scalar_lea.vmem (!%p160_p0), [#allocation4], %s185_s18  ;;  %s1469_s8 = smov (!%p160_p0), [#allocation4]  }
  0x20   : > { %s957_s23 = sshll.u32 (!%p160_p0), %s186_s19, 4  ;;  %s1406_s9 = sshll.u32 (!%p160_p0), %s1469_s8, 4  ;;  %s958_s23 = int_to_ptr.vmem [resolvable:$true] %s957_s23  ;;  %s1407_s9 = int_to_ptr.vmem [resolvable:$false] %s1406_s9 }
  0x21   : > { %p1409_p5 = scmp.lt.s32.totalorder (!%p160_p0), %s958_s23, %s1407_s9 }
  0x22   : > { %v1467_v0 = vmov 0.0   ;;  %vm1468_vm0 = vmmov 0   ;;  %s189_s6 = scalar_select %p188_p1, %s1547_s5, 31  ;;  %vm250_vm1 = vcmask 261120  }
  0x23   : > { %1138 = vmatprep.subr.mxu0 %v1467_v0  ;;  %1173 = vmatprep.subr.mxu1 %v1467_v0  ;;  %s248_s17 = scalar_lea.vmem %s2023_s3, %s1700_s14 }
  0x24   : > { %1170 = vmatprep.mubr.msk.f32.mxu0 %vm1468_vm0, %v1467_v0  ;;  %1205 = vmatprep.mubr.msk.f32.mxu1 %vm1468_vm0, %v1467_v0  ;;  %s1030_s7 = sshll.u32 %s189_s6, 3  ;;  %s945_s6 = scalar_lea.sflag [#allocation5], %s185_s18 }
  0x25   : > { %s1560_s10 = scalar_lea.vmem %s2021_s1, %s1030_s7  ;;  %s1565_s13 = scalar_lea.vmem %s2022_s2, %s1030_s7 }
  0x26   : > { %v215_v1 = vld [vmem:[%s1560_s10 + $0x78] sm:$0xff]  ;;  %v214_v3 = vld [vmem:[%s1560_s10 + $0x70] sm:$0xff]  ;;  %v213_v6 = vld [vmem:[%s1560_s10 + $0x68] sm:$0xff]  ;;  %s1402_s7 = scalar_lea.vmem %s958_s23, 16 }
  0x27   : > { %v231_v2 = vld [vmem:[%s1565_s13 + $0x78] sm:$0xff]  ;;  %v230_v5 = vld [vmem:[%s1565_s13 + $0x70] sm:$0xff]  ;;  %v229_v7 = vld [vmem:[%s1565_s13 + $0x68] sm:$0xff]  ;;  %p1403_p2 = scmp.ne.s32.totalorder %s958_s23, %s1402_s7 }
  0x28   : > { %v247_v4 = vmul.f32 %v231_v2, %v215_v1  ;;  %v246_v8 = vmul.f32 %v230_v5, %v214_v3  ;;  %v245_v9 = vmul.f32 %v229_v7, %v213_v6  ;;  %v212_v10 = vld [vmem:[%s1560_s10 + $0x60] sm:$0xff]  ;;  %v211_v12 = vld [vmem:[%s1560_s10 + $0x58] sm:$0xff]  ;;  %v210_v16 = vld [vmem:[%s1560_s10 + $0x50] sm:$0xff] }
  0x29   : > { %v228_v11 = vld [vmem:[%s1565_s13 + $0x60] sm:$0xff]  ;;  %v227_v15 = vld [vmem:[%s1565_s13 + $0x58] sm:$0xff]  ;;  %v226_v17 = vld [vmem:[%s1565_s13 + $0x50] sm:$0xff]  ;;  %p1404_p3 = pnand %p1403_p2, %p1536_p10 }
  0x2a   : > { %v300_v13 = vsel %vm250_vm1, %v247_v4, 0  ;;  %v244_v14 = vmul.f32 %v228_v11, %v212_v10  ;;  %v297_v19 = vsel %vm250_vm1, %v246_v8, 0  ;;  %v294_v20 = vsel %vm250_vm1, %v245_v9, 0  ;;  %v209_v29 = vld [vmem:[%s1560_s10 + $0x48] sm:$0xff]  ;;  %v208_v42 = vld [vmem:[%s1560_s10 + $0x40] sm:$0xff]  ;;  %v207_v52 = vld [vmem:[%s1560_s10 + $0x38] sm:$0xff] }
  0x2b   : > { %v1580_v18 = vand.u32 4294901760, %v300_v13  ;;  %v243_v21 = vmul.f32 %v227_v15, %v211_v12  ;;  %v1584_v22 = vand.u32 4294901760, %v297_v19  ;;  %v1586_v23 = vand.u32 4294901760, %v294_v20  ;;  %v225_v30 = vld [vmem:[%s1565_s13 + $0x48] sm:$0xff]  ;;  %v224_v43 = vld [vmem:[%s1565_s13 + $0x40] sm:$0xff]  ;;  %v223_v53 = vld [vmem:[%s1565_s13 + $0x38] sm:$0xff]  ;;  %p1405_p4 = pneg %p1404_p3 }
  0x2c   : > { %v291_v24 = vsel %vm250_vm1, %v244_v14, 0  ;;  %v242_v28 = vmul.f32 %v226_v17, %v210_v16  ;;  %v241_v36 = vmul.f32 %v225_v30, %v209_v29  ;;  %v240_v51 = vmul.f32 %v224_v43, %v208_v42  ;;  %v206_v61 = vld [vmem:[%s1560_s10 + $0x30] sm:$0xff]  ;;  %v205_v7 = vld [vmem:[%s1560_s10 + $0x28] sm:$0xff]  ;;  %v204_v14 = vld [vmem:[%s1560_s10 + $0x20] sm:$0xff] }
  0x2d   : > { %1139 = vmatpush3.xpose.msra.mxu0 %v1580_v18  ;;  %v1591_v25 = vsub.f32 %v300_v13, %v1580_v18  ;;  %v1593_v26 = vand.u32 4294901760, %v291_v24  ;;  %v288_v27 = vsel %vm250_vm1, %v243_v21, 0  ;;  %v1600_v31 = vsub.f32 %v297_v19, %v1584_v22  ;;  %v222_v62 = vld [vmem:[%s1565_s13 + $0x30] sm:$0xff]  ;;  %v221_v8 = vld [vmem:[%s1565_s13 + $0x28] sm:$0xff]  ;;  %v220_v15 = vld [vmem:[%s1565_s13 + $0x20] sm:$0xff] }
  0x2e   : > { %1140 = vmatprep.subr.mxu0 %v1467_v0  ;;  %v1603_v32 = vsub.f32 %v294_v20, %v1586_v23  ;;  %v1607_v35 = vand.u32 4294901760, %v288_v27  ;;  %v285_v39 = vsel %vm250_vm1, %v242_v28, 0  ;;  %v282_v46 = vsel %vm250_vm1, %v241_v36, 0  ;;  %v203_v29 = vld [vmem:[%s1560_s10 + $0x18] sm:$0xff] }
  0x2f   : > { %v396_v33 = vand.u32 4294901760, %v1591_v25  ;;  %v403_v34 = vand.u32 4294901760, %v1600_v31  ;;  %v1616_v40 = vsub.f32 %v291_v24, %v1593_v26  ;;  %v1624_v45 = vand.u32 4294901760, %v285_v39  ;;  %v219_v30 = vld [vmem:[%s1565_s13 + $0x18] sm:$0xff] }
  0x30   : > { %v410_v38 = vand.u32 4294901760, %v1603_v32  ;;  %v1628_v47 = vsub.f32 %v288_v27, %v1607_v35  ;;  %v1639_v54 = vand.u32 4294901760, %v282_v46  ;;  %v279_v59 = vsel %vm250_vm1, %v240_v51, 0 }
  0x31   : > { %1141 = vmatpush3.xpose.msra.mxu0 %v1584_v22  ;;  %v397_v37 = vsub.f32 %v1591_v25, %v396_v33  ;;  %v404_v41 = vsub.f32 %v1600_v31, %v403_v34  ;;  %v417_v50 = vand.u32 4294901760, %v1616_v40  ;;  %v1642_v55 = vsub.f32 %v285_v39, %v1624_v45 }
  0x32   : > { %1142 = vmatprep.subr.mxu0 %v1467_v0  ;;  %v411_v49 = vsub.f32 %v1603_v32, %v410_v38  ;;  %v424_v58 = vand.u32 4294901760, %v1628_v47  ;;  %v239_v60 = vmul.f32 %v223_v53, %v207_v52  ;;  %v1654_v63 = vand.u32 4294901760, %v279_v59 }
  0x33   : > { %v398_v44 = vand.u32 4294901760, %v397_v37  ;;  %v405_v48 = vand.u32 4294901760, %v404_v41  ;;  %v418_v57 = vsub.f32 %v1616_v40, %v417_v50  ;;  %v431_v3 = vand.u32 4294901760, %v1642_v55 }
  0x34   : > { %v412_v56 = vand.u32 4294901760, %v411_v49  ;;  %v425_v2 = vsub.f32 %v1628_v47, %v424_v58  ;;  %v1662_v4 = vsub.f32 %v282_v46, %v1639_v54  ;;  %v276_v5 = vsel %vm250_vm1, %v239_v60, 0  ;;  %v218_v49 = vld [vmem:[%s1565_s13 + $0x10] sm:$0xff] }
  0x35   : > { %1143 = vmatpush3.xpose.msra.mxu0 %v1586_v23  ;;  %1174 = vmatpush3.xpose.msra.mxu1 %v398_v44  ;;  %v419_v1 = vand.u32 4294901760, %v418_v57  ;;  %v238_v6 = vmul.f32 %v222_v62, %v206_v61  ;;  %v1670_v9 = vsub.f32 %v279_v59, %v1654_v63  ;;  %v432_v11 = vsub.f32 %v1642_v55, %v431_v3  ;;  %v201_v61 = vld [vmem:[%s1560_s10 + $0x8] sm:$0xff] }
  0x36   : > { %1144 = vmatprep.subr.mxu0 %v1467_v0  ;;  %1175 = vmatprep.subr.mxu1 %v1467_v0  ;;  %v426_v10 = vand.u32 4294901760, %v425_v2  ;;  %v1676_v12 = vand.u32 4294901760, %v276_v5  ;;  %v438_v13 = vand.u32 4294901760, %v1662_v4  ;;  %v237_v17 = vmul.f32 %v221_v8, %v205_v7  ;;  %v217_v62 = vld [vmem:[%s1565_s13 + $0x8] sm:$0xff] }
  0x37   : > { %v273_v16 = vsel %vm250_vm1, %v238_v6, 0  ;;  %v445_v19 = vand.u32 4294901760, %v1670_v9  ;;  %v236_v20 = vmul.f32 %v220_v15, %v204_v14  ;;  %v433_v21 = vand.u32 4294901760, %v432_v11  ;;  %v249_v11 = vld [vmem:[%s248_s17] sm:$0x1] }
  0x38   : > { %v439_v24 = vsub.f32 %v1662_v4, %v438_v13  ;;  %v1689_v27 = vand.u32 4294901760, %v273_v16  ;;  %v1692_v28 = vsub.f32 %v276_v5, %v1676_v12  ;;  %v270_v36 = vsel %vm250_vm1, %v237_v17, 0  ;;  %v200_v14 = vld [vmem:[%s1560_s10] sm:$0xff] }
  0x39   : > { %1145 = vmatpush3.xpose.msra.mxu0 %v1593_v26  ;;  %1176 = vmatpush3.xpose.msra.mxu1 %v405_v48  ;;  %v446_v37 = vsub.f32 %v1670_v9, %v445_v19  ;;  %v267_v39 = vsel %vm250_vm1, %v236_v20, 0  ;;  %v235_v41 = vmul.f32 %v219_v30, %v203_v29  ;;  %v1707_v43 = vand.u32 4294901760, %v270_v36  ;;  %v202_v48 = vld [vmem:[%s1560_s10 + $0x10] sm:$0xff]  ;;  %v216_v15 = vld [vmem:[%s1565_s13] sm:$0xff]  ;;  %s1408_s10 = scalar_lea.vmem %s1407_s9, 32 }
  0x3a   : > { %1146 = vmatprep.subr.mxu0 %v1467_v0  ;;  %1177 = vmatprep.subr.mxu1 %v1467_v0  ;;  %v440_v42 = vand.u32 4294901760, %v439_v24  ;;  %v452_v44 = vand.u32 4294901760, %v1692_v28  ;;  %v1711_v46 = vsub.f32 %v273_v16, %v1689_v27  ;;  %v1717_v51 = vand.u32 4294901760, %v267_v39  ;;  %p1410_p6 = scmp.lt.s32.totalorder %s1408_s10, %s1402_s7 }
  0x3b   : > { %v264_v52 = vsel %vm250_vm1, %v235_v41, 0  ;;  %v234_v53 = vmul.f32 %v218_v49, %v202_v48  ;;  %v1726_v60 = vsub.f32 %v270_v36, %v1707_v43  ;;  %v252_v29 = vsel %vm250_vm1, %v249_v11, 0 }
  0x3c   : > { %v453_v57 = vsub.f32 %v1692_v28, %v452_v44  ;;  %v459_v59 = vand.u32 4294901760, %v1711_v46  ;;  %v1745_v8 = vsub.f32 %v267_v39, %v1717_v51  ;;  %v232_v36 = vmul.f32 %v216_v15, %v200_v14  ;;  %p1411_p7 = por %p1410_p6, %p1409_p5 }
  0x3d   : > { %1147 = vmatpush3.xpose.msra.mxu0 %v1607_v35  ;;  %1178 = vmatpush3.xpose.msra.mxu1 %v412_v56  ;;  %v447_v56 = vand.u32 4294901760, %v446_v37  ;;  %v261_v2 = vsel %vm250_vm1, %v234_v53, 0  ;;  %v466_v7 = vand.u32 4294901760, %v1726_v60  ;;  %v1766_v39 = vand.u32 4294901760, %v252_v29 }
  0x3e   : > { %1148 = vmatprep.subr.mxu0 %v1467_v0  ;;  %1179 = vmatprep.subr.mxu1 %v1467_v0  ;;  %v454_v5 = vand.u32 4294901760, %v453_v57  ;;  %v460_v6 = vsub.f32 %v1711_v46, %v459_v59  ;;  %v1751_v16 = vand.u32 4294901760, %v261_v2  ;;  %v473_v24 = vand.u32 4294901760, %v1745_v8  ;;  %p1412_p8 = pnand %p1411_p7, %p1405_p4 }
  0x40   : > { %v461_v20 = vand.u32 4294901760, %v460_v6  ;;  %v1775_v49 = vsub.f32 %v261_v2, %v1751_v16 }
  0x41   : > { %1149 = vmatpush3.xpose.msra.mxu0 %v1624_v45  ;;  %1180 = vmatpush3.xpose.msra.mxu1 %v419_v1  ;;  %v1736_v1 = vand.u32 4294901760, %v264_v52 }
  0x42   : > { %1150 = vmatprep.subr.mxu0 %v1467_v0  ;;  %1181 = vmatprep.subr.mxu1 %v1467_v0 }
  0x43   : > { %v1754_v17 = vsub.f32 %v264_v52, %v1736_v1  ;;  %v255_v52 = vsel %vm250_vm1, %v232_v36, 0 }
  0x45   : > { %1151 = vmatpush3.xpose.msra.mxu0 %v1639_v54  ;;  %1182 = vmatpush3.xpose.msra.mxu1 %v426_v10  ;;  %v233_v10 = vmul.f32 %v217_v62, %v201_v61  ;;  %v480_v37 = vand.u32 4294901760, %v1754_v17  ;;  %v1787_v61 = vand.u32 4294901760, %v255_v52  ;;  %v487_v62 = vand.u32 4294901760, %v1775_v49 }
  0x46   : > { %1152 = vmatprep.subr.mxu0 %v1467_v0  ;;  %1183 = vmatprep.subr.mxu1 %v1467_v0 }
  0x47   : > { %v258_v30 = vsel %vm250_vm1, %v233_v10, 0  ;;  %v481_v53 = vsub.f32 %v1754_v17, %v480_v37  ;;  %v488_v10 = vsub.f32 %v1775_v49, %v487_v62  ;;  %v1802_v14 = vsub.f32 %v255_v52, %v1787_v61 }
  0x48   : > { %v1772_v48 = vand.u32 4294901760, %v258_v30 }
  0x49   : > { %1153 = vmatpush3.xpose.msra.mxu0 %v1654_v63  ;;  %1184 = vmatpush3.xpose.msra.mxu1 %v433_v21  ;;  %v467_v21 = vsub.f32 %v1726_v60, %v466_v7  ;;  %v482_v6 = vand.u32 4294901760, %v481_v53 }
  0x4a   : > { %1154 = vmatprep.subr.mxu0 %v1467_v0  ;;  %1185 = vmatprep.subr.mxu1 %v1467_v0  ;;  %v1791_v2 = vsub.f32 %v258_v30, %v1772_v48 }
  0x4b   : > { %v468_v41 = vand.u32 4294901760, %v467_v21 }
  0x4c   : > { %v494_v11 = vand.u32 4294901760, %v1791_v2 }
  0x4d   : > { %1155 = vmatpush3.xpose.msra.mxu0 %v1676_v12  ;;  %1186 = vmatpush3.xpose.msra.mxu1 %v440_v42  ;;  %v474_v42 = vsub.f32 %v1745_v8, %v473_v24 }
  0x4e   : > { %1156 = vmatprep.subr.mxu0 %v1467_v0  ;;  %1187 = vmatprep.subr.mxu1 %v1467_v0  ;;  %v495_v21 = vsub.f32 %v1791_v2, %v494_v11 }
  0x4f   : > { %v475_v57 = vand.u32 4294901760, %v474_v42 }
  0x50   : > { %v496_v36 = vand.u32 4294901760, %v495_v21 }
  0x51   : > { %1157 = vmatpush3.xpose.msra.mxu0 %v1689_v27  ;;  %1188 = vmatpush3.xpose.msra.mxu1 %v447_v56  ;;  %v1784_v56 = vsub.f32 %v252_v29, %v1766_v39  ;;  %v501_v29 = vand.u32 4294901760, %v1802_v14 }
  0x52   : > { %1158 = vmatprep.subr.mxu0 %v1467_v0  ;;  %1189 = vmatprep.subr.mxu1 %v1467_v0 }
  0x55   : > { %1159 = vmatpush3.xpose.msra.mxu0 %v1707_v43  ;;  %1190 = vmatpush3.xpose.msra.mxu1 %v454_v5  ;;  %v385_v5 = vand.u32 4294901760, %v1784_v56 }
  0x56   : > { %1160 = vmatprep.subr.mxu0 %v1467_v0  ;;  %1191 = vmatprep.subr.mxu1 %v1467_v0 }
  0x57   : > { %v386_v15 = vsub.f32 %v1784_v56, %v385_v5 }
  0x59   : > { %1161 = vmatpush3.xpose.msra.mxu0 %v1717_v51  ;;  %1192 = vmatpush3.xpose.msra.mxu1 %v461_v20  ;;  %v489_v20 = vand.u32 4294901760, %v488_v10  ;;  %v387_v30 = vand.u32 4294901760, %v386_v15 }
  0x5a   : > { %1162 = vmatprep.subr.mxu0 %v1467_v0  ;;  %1193 = vmatprep.subr.mxu1 %v1467_v0 }
  0x5d   : > { %1163 = vmatpush3.xpose.msra.mxu0 %v1736_v1  ;;  %1194 = vmatpush3.xpose.msra.mxu1 %v468_v41  ;;  %v502_v41 = vsub.f32 %v1802_v14, %v501_v29 }
  0x5e   : > { %1164 = vmatprep.subr.mxu0 %v1467_v0  ;;  %1195 = vmatprep.subr.mxu1 %v1467_v0 }
  0x5f   : > { %v503_v42 = vand.u32 4294901760, %v502_v41 }
  0x61   : > { %1165 = vmatpush3.xpose.msra.mxu0 %v1751_v16  ;;  %1196 = vmatpush3.xpose.msra.mxu1 %v475_v57 }
  0x62   : > { %1166 = vmatprep.subr.mxu0 %v1467_v0  ;;  %1197 = vmatprep.subr.mxu1 %v1467_v0 }
  0x65   : > { %1167 = vmatpush3.xpose.msra.mxu0 %v1772_v48  ;;  %1198 = vmatpush3.xpose.msra.mxu1 %v482_v6 }
  0x66   : > { %1168 = vmatprep.subr.mxu0 %v1467_v0  ;;  %1199 = vmatprep.subr.mxu1 %v1467_v0 }
  0x69   : > { %1169 = vmatpush3.xpose.msra.mxu0 %v1787_v61  ;;  %1200 = vmatpush3.xpose.msra.mxu1 %v489_v20 }
  0x6a   : > { %1201 = vmatprep.subr.mxu1 %v1467_v0  ;;  %1208 = vmatprep.subr.mxu0 %v1467_v0 }
  0x6c   : > { %1171 = vmatmul.mubr.f32.vlgmr.msra.gmra.mxu0 %v387_v30 }
  0x6d   : > { %1202 = vmatpush3.xpose.msra.mxu1 %v496_v36  ;;  %1209 = vmatpush3.xpose.msra.mxu0 %v1591_v25 }
  0x6e   : > { %1203 = vmatprep.subr.mxu1 %v1467_v0  ;;  %1210 = vmatprep.subr.mxu0 %v1467_v0 }
  0x6f   : > { %1240 = vmatprep.mubr.msk.f32.mxu0 %vm1468_vm0, %v1467_v0 }
  0x71   : > { %1204 = vmatpush3.xpose.msra.mxu1 %v503_v42  ;;  %1211 = vmatpush3.xpose.msra.mxu0 %v1600_v31 }
  0x72   : > { %1212 = vmatprep.subr.mxu0 %v1467_v0  ;;  %1243 = vmatprep.subr.mxu1 %v1467_v0 }
  0x74   : > { %1206 = vmatmul.mubr.f32.vlgmr.msra.gmra.mxu1 %v1766_v39 }
  0x75   : > { %1213 = vmatpush3.xpose.msra.mxu0 %v1603_v32  ;;  %1244 = vmatpush3.xpose.msra.mxu1 %v1580_v18 }
  0x76   : > { %1214 = vmatprep.subr.mxu0 %v1467_v0  ;;  %1245 = vmatprep.subr.mxu1 %v1467_v0 }
  0x77   : > { %1275 = vmatprep.mubr.msk.f32.mxu1 %vm1468_vm0, %v1467_v0 }
  0x79   : > { %1215 = vmatpush3.xpose.msra.mxu0 %v1616_v40  ;;  %1246 = vmatpush3.xpose.msra.mxu1 %v1584_v22 }
  0x7a   : > { %1216 = vmatprep.subr.mxu0 %v1467_v0  ;;  %1247 = vmatprep.subr.mxu1 %v1467_v0 }
  0x7d   : > { %1217 = vmatpush3.xpose.msra.mxu0 %v1628_v47  ;;  %1248 = vmatpush3.xpose.msra.mxu1 %v1586_v23 }
  0x7e   : > { %1218 = vmatprep.subr.mxu0 %v1467_v0  ;;  %1249 = vmatprep.subr.mxu1 %v1467_v0 }
  0x81   : > { %1219 = vmatpush3.xpose.msra.mxu0 %v1642_v55  ;;  %1250 = vmatpush3.xpose.msra.mxu1 %v1593_v26 }
  0x82   : > { %1220 = vmatprep.subr.mxu0 %v1467_v0  ;;  %1251 = vmatprep.subr.mxu1 %v1467_v0 }
  0x85   : > { %1221 = vmatpush3.xpose.msra.mxu0 %v1662_v4  ;;  %1252 = vmatpush3.xpose.msra.mxu1 %v1607_v35 }
  0x86   : > { %1222 = vmatprep.subr.mxu0 %v1467_v0  ;;  %1253 = vmatprep.subr.mxu1 %v1467_v0 }
  0x89   : > { %1223 = vmatpush3.xpose.msra.mxu0 %v1670_v9  ;;  %1254 = vmatpush3.xpose.msra.mxu1 %v1624_v45 }
  0x8a   : > { %1224 = vmatprep.subr.mxu0 %v1467_v0  ;;  %1255 = vmatprep.subr.mxu1 %v1467_v0 }
  0x8d   : > { %1225 = vmatpush3.xpose.msra.mxu0 %v1692_v28  ;;  %1256 = vmatpush3.xpose.msra.mxu1 %v1639_v54 }
  0x8e   : > { %1226 = vmatprep.subr.mxu0 %v1467_v0  ;;  %1257 = vmatprep.subr.mxu1 %v1467_v0 }
  0x91   : > { %1227 = vmatpush3.xpose.msra.mxu0 %v1711_v46  ;;  %1258 = vmatpush3.xpose.msra.mxu1 %v1654_v63 }
  0x92   : > { %1228 = vmatprep.subr.mxu0 %v1467_v0  ;;  %1259 = vmatprep.subr.mxu1 %v1467_v0 }
  0x95   : > { %1229 = vmatpush3.xpose.msra.mxu0 %v1726_v60  ;;  %1260 = vmatpush3.xpose.msra.mxu1 %v1676_v12 }
  0x96   : > { %1230 = vmatprep.subr.mxu0 %v1467_v0  ;;  %1261 = vmatprep.subr.mxu1 %v1467_v0 }
  0x99   : > { %1231 = vmatpush3.xpose.msra.mxu0 %v1745_v8  ;;  %1262 = vmatpush3.xpose.msra.mxu1 %v1689_v27 }
  0x9a   : > { %1232 = vmatprep.subr.mxu0 %v1467_v0  ;;  %1263 = vmatprep.subr.mxu1 %v1467_v0 }
  0x9d   : > { %1233 = vmatpush3.xpose.msra.mxu0 %v1754_v17  ;;  %1264 = vmatpush3.xpose.msra.mxu1 %v1707_v43 }
  0x9e   : > { %1234 = vmatprep.subr.mxu0 %v1467_v0  ;;  %1265 = vmatprep.subr.mxu1 %v1467_v0 }
  0xa1   : > { %1235 = vmatpush3.xpose.msra.mxu0 %v1775_v49  ;;  %1266 = vmatpush3.xpose.msra.mxu1 %v1717_v51 }
  0xa2   : > { %1236 = vmatprep.subr.mxu0 %v1467_v0  ;;  %1267 = vmatprep.subr.mxu1 %v1467_v0 }
  0xa5   : > { %1237 = vmatpush3.xpose.msra.mxu0 %v1791_v2  ;;  %1268 = vmatpush3.xpose.msra.mxu1 %v1736_v1 }
  0xa6   : > { %1238 = vmatprep.subr.mxu0 %v1467_v0  ;;  %1269 = vmatprep.subr.mxu1 %v1467_v0 }
  0xa9   : > { %1239 = vmatpush3.xpose.msra.mxu0 %v1802_v14  ;;  %1270 = vmatpush3.xpose.msra.mxu1 %v1751_v16 }
  0xaa   : > { %1271 = vmatprep.subr.mxu1 %v1467_v0  ;;  %1278 = vmatprep.subr.mxu0 %v1467_v0 }
  0xac   : > { %1241 = vmatmul.mubr.f32.vlgmr.msra.gmra.mxu0 %v1784_v56 }
  0xad   : > { %1272 = vmatpush3.xpose.msra.mxu1 %v1772_v48  ;;  %1279 = vmatpush3.xpose.msra.mxu0 %v396_v33 }
  0xae   : > { %1273 = vmatprep.subr.mxu1 %v1467_v0  ;;  %1280 = vmatprep.subr.mxu0 %v1467_v0 }
  0xaf   : > { %1310 = vmatprep.mubr.msk.f32.mxu0 %vm1468_vm0, %v1467_v0 }
  0xb1   : > { %1274 = vmatpush3.xpose.msra.mxu1 %v1787_v61  ;;  %1281 = vmatpush3.xpose.msra.mxu0 %v403_v34 }
  0xb2   : > { %1282 = vmatprep.subr.mxu0 %v1467_v0  ;;  %1313 = vmatprep.subr.mxu1 %v1467_v0 }
  0xb4   : > { %1276 = vmatmul.mubr.f32.vlgmr.msra.gmra.mxu1 %v385_v5 }
  0xb5   : > { %1283 = vmatpush3.xpose.msra.mxu0 %v410_v38  ;;  %1314 = vmatpush3.xpose.msra.mxu1 %v1580_v18 }
  0xb6   : > { %1284 = vmatprep.subr.mxu0 %v1467_v0  ;;  %1315 = vmatprep.subr.mxu1 %v1467_v0 }
  0xb7   : > { %1345 = vmatprep.mubr.msk.f32.mxu1 %vm1468_vm0, %v1467_v0 }
  0xb9   : > { %1285 = vmatpush3.xpose.msra.mxu0 %v417_v50  ;;  %1316 = vmatpush3.xpose.msra.mxu1 %v1584_v22 }
  0xba   : > { %1286 = vmatprep.subr.mxu0 %v1467_v0  ;;  %1317 = vmatprep.subr.mxu1 %v1467_v0 }
  0xbd   : > { %1287 = vmatpush3.xpose.msra.mxu0 %v424_v58  ;;  %1318 = vmatpush3.xpose.msra.mxu1 %v1586_v23 }
  0xbe   : > { %1288 = vmatprep.subr.mxu0 %v1467_v0  ;;  %1319 = vmatprep.subr.mxu1 %v1467_v0 }
  0xc1   : > { %1289 = vmatpush3.xpose.msra.mxu0 %v431_v3  ;;  %1320 = vmatpush3.xpose.msra.mxu1 %v1593_v26 }
  0xc2   : > { %1290 = vmatprep.subr.mxu0 %v1467_v0  ;;  %1321 = vmatprep.subr.mxu1 %v1467_v0 }
  0xc5   : > { %1291 = vmatpush3.xpose.msra.mxu0 %v438_v13  ;;  %1322 = vmatpush3.xpose.msra.mxu1 %v1607_v35 }
  0xc6   : > { %1292 = vmatprep.subr.mxu0 %v1467_v0  ;;  %1323 = vmatprep.subr.mxu1 %v1467_v0 }
  0xc9   : > { %1293 = vmatpush3.xpose.msra.mxu0 %v445_v19  ;;  %1324 = vmatpush3.xpose.msra.mxu1 %v1624_v45 }
  0xca   : > { %1294 = vmatprep.subr.mxu0 %v1467_v0  ;;  %1325 = vmatprep.subr.mxu1 %v1467_v0 }
  0xcd   : > { %1295 = vmatpush3.xpose.msra.mxu0 %v452_v44  ;;  %1326 = vmatpush3.xpose.msra.mxu1 %v1639_v54 }
  0xce   : > { %1296 = vmatprep.subr.mxu0 %v1467_v0  ;;  %1327 = vmatprep.subr.mxu1 %v1467_v0 }
  0xd1   : > { %1297 = vmatpush3.xpose.msra.mxu0 %v459_v59  ;;  %1328 = vmatpush3.xpose.msra.mxu1 %v1654_v63 }
  0xd2   : > { %1298 = vmatprep.subr.mxu0 %v1467_v0  ;;  %1329 = vmatprep.subr.mxu1 %v1467_v0 }
  0xd5   : > { %1299 = vmatpush3.xpose.msra.mxu0 %v466_v7  ;;  %1330 = vmatpush3.xpose.msra.mxu1 %v1676_v12 }
  0xd6   : > { %1300 = vmatprep.subr.mxu0 %v1467_v0  ;;  %1331 = vmatprep.subr.mxu1 %v1467_v0 }
  0xd9   : > { %1301 = vmatpush3.xpose.msra.mxu0 %v473_v24  ;;  %1332 = vmatpush3.xpose.msra.mxu1 %v1689_v27 }
  0xda   : > { %1302 = vmatprep.subr.mxu0 %v1467_v0  ;;  %1333 = vmatprep.subr.mxu1 %v1467_v0 }
  0xdd   : > { %1303 = vmatpush3.xpose.msra.mxu0 %v480_v37  ;;  %1334 = vmatpush3.xpose.msra.mxu1 %v1707_v43 }
  0xde   : > { %1304 = vmatprep.subr.mxu0 %v1467_v0  ;;  %1335 = vmatprep.subr.mxu1 %v1467_v0 }
  0xe1   : > { %1305 = vmatpush3.xpose.msra.mxu0 %v487_v62  ;;  %1336 = vmatpush3.xpose.msra.mxu1 %v1717_v51 }
  0xe2   : > { %1306 = vmatprep.subr.mxu0 %v1467_v0  ;;  %1337 = vmatprep.subr.mxu1 %v1467_v0 }
  0xe5   : > { %1307 = vmatpush3.xpose.msra.mxu0 %v494_v11  ;;  %1338 = vmatpush3.xpose.msra.mxu1 %v1736_v1 }
  0xe6   : > { %1308 = vmatprep.subr.mxu0 %v1467_v0  ;;  %1339 = vmatprep.subr.mxu1 %v1467_v0 }
  0xe9   : > { %1309 = vmatpush3.xpose.msra.mxu0 %v501_v29  ;;  %1340 = vmatpush3.xpose.msra.mxu1 %v1751_v16 }
  0xea   : > { %1341 = vmatprep.subr.mxu1 %v1467_v0 }
  0xec   : > { %1311 = vmatmul.mubr.f32.vlgmr.msra.gmra.mxu0 %v1766_v39 }
  0xed   : > { %1342 = vmatpush3.xpose.msra.mxu1 %v1772_v48 }
  0xee   : > { %1343 = vmatprep.subr.mxu1 %v1467_v0 }
  0xf1   : > { %1344 = vmatpush3.xpose.msra.mxu1 %v1787_v61 }
  0xf4   : > { %1346 = vmatmul.mubr.f32.vlgmr.msra.gmra.mxu1 %v1766_v39 }
 0x12c   : > { %v389_v18 = vpop.f32.mrf.mxu0 }
 0x12e   : > { %v1172_v22 = vpop.f32.mrf.mxu0 }
 0x134   : > { %v540_v23 = vpop.f32.mrf.mxu1 }
 0x135   : > { %v541_v25 = vadd.f32 %v540_v23, %v389_v18 }
 0x136   : > { %v1207_v26 = vpop.f32.mrf.mxu1 }
 0x16c   : > { %v644_v31 = vpop.f32.mrf.mxu0 }
 0x16d   : > { %v645_v32 = vadd.f32 %v644_v31, %v541_v25 }
 0x16e   : > { %v1242_v33 = vpop.f32.mrf.mxu0 }
 0x174   : > { %v733_v34 = vpop.f32.mrf.mxu1 }
 0x175   : > { %v734_v0 = vadd.f32 %v733_v34, %v645_v32 }
 0x176   : > { %v1277_v35 = vpop.f32.mrf.mxu1 }
 0x1ac   : > { %v852_v38 = vpop.f32.mrf.mxu0 }
 0x1ad   : > { %v853_v45 = vadd.f32 %v852_v38, %v734_v0 }
 0x1ae   : > { %v1312_v40 = vpop.f32.mrf.mxu0 }
 0x1b4   : > { %v939_v47 = vpop.f32.mrf.mxu1 }
 0x1b5   : > { %v940_v50 = vadd.f32 %v939_v47, %v853_v45 }
 0x1b6   : > { %v1347_v54 = vpop.f32.mrf.mxu1 }
 0x1b7   : > { %943 = vst [vmem:[%s186_s19] sm:$0x1] %v940_v50 }
 0x1b8   : > { %1415 = shalt.err (!%p1412_p8)
}
 0x1b9   : > { %s1416_s5 = scalar_lea.hbm %s1985_s27, 16  ;;  %s1420_s13 = scalar_lea.hbm %s2024_s4, 32 }
 0x1ba   : > { %p1417_p9 = scmp.ne.s32.totalorder %s1985_s27, %s1416_s5  ;;  %p1421_p0 = scmp.lt.s32.totalorder %s1985_s27, %s2024_s4 }
 0x1bb   : > { %p1422_p1 = scmp.lt.s32.totalorder %s1420_s13, %s1416_s5 }
 0x1bc   : > { %p1418_p12 = pnand %p1417_p9, %p1536_p10 }
 0x1bd   : > { %p1423_p2 = por %p1422_p1, %p1421_p0 }
 0x1be   : > { %p1419_p13 = pneg %p1418_p12 }
 0x1c0   : > { %p1424_p3 = pnand %p1423_p2, %p1419_p13 }
 0x1c2   : > { %1427 = shalt.err (!%p1424_p3)
}
 0x1c3   : > { %1348 = dma.vmem_to_hbm [thread:$0]  (%p1536_p10), %s958_s23, 16, %s1985_s27, %s945_s6  }
 0x1c4 PF: > { %p1354_p4 = scmp.ge.s32.totalorder %s1464_s22, 2  ;;  %s969_s16 = sand.u32 1, %s1452_s20  }
 0x1c5   : > { %s970_s17 = scalar_lea.sflag [#allocation5], %s969_s16 }
 0x1c6   : > { %p1351_p5 = pnand %p1354_p4, %p1540_p11 }
 0x1c8   : > { %p1352_p6 = pneg %p1351_p5 }
 0x1ca   : > { %1447 = dma.done.wait (%p1352_p6), %s970_s17, 16  }
 0x1cb   : > { %1449 = vsyncadd (%p1352_p6), %s970_s17, 4294967280  ;;  %p20_p7 = scmp.ge.s32.totalorder %s1523_s25, 4   ;;  %s2027_s20 = smov %s1456_s21 }
 0x1cc   : > { %s2028_s21 = smov %s1460_s0  ;;  %s2029_s0 = smov %s1534_s28 }
 0x1cd   : > { %s2030_s22 = smov %s1523_s25  ;;  %22 = sbr.rel (!%p20_p7) target bundleno = 18 (0x12), region = 71 }
 0x1d2   :  { %974 = vsyncpa [#allocation5], 1 }
 0x1d3   :  { %976 = vsyncpa [#allocation5 + $0x1], 1 }

</bundles_post_ra>
